<compile_context>
chip_gen: v5e
topology: v5e:2x2
jax: 0.10.0
libtpu: 0.0.40
codegen_flags: <defaults>
</compile_context>

<pallas_src>
import functools

import jax
import jax.numpy as jnp
from jax.experimental import pallas as pl
from jax.experimental.pallas import tpu as pltpu


def _chip_budgets():
    """(block_budget_bytes, vmem_limit_bytes) sized per TPU generation."""
    try:
        cap = int(pltpu.get_tpu_info().vmem_capacity_bytes)
    except Exception:
        cap = 64 * 1024 * 1024                       # conservative (v7x-sized) fallback
    if cap >= 96 * 1024 * 1024:                      # v5e / v6e: 128 MiB physical VMEM
        return 6 * 1024 * 1024, 80 * 1024 * 1024
    return 4 * 1024 * 1024, 44 * 1024 * 1024         # v7x: 64 MiB physical VMEM


def _plan_blocks(N, C, HW, budget_bytes):
    """Pick (bn, tile_m) for a (bn, C, tile_m) block; bn always divides N."""
    c_pad = ((C + 7) // 8) * 8                       # f32 sublane padding of the C axis
    max_lanes = max(128, budget_bytes // (c_pad * 4))
    if HW <= max_lanes:
        # Whole spatial extent on the lane axis; fold batch rows into the block.
        bn_cap = max(1, min(N, max_lanes // HW))
        bn = 1
        for d in range(bn_cap, 0, -1):
            if N % d == 0:
                bn = d
                break
        return bn, HW                                # full-extent lane block: always legal
    # Spatial axis tiled: 128-multiple tile; prefer an exact divisor (no tail mask).
    tile_m = (max_lanes // 128) * 128
    if HW % 128 == 0:
        lo = max(128, tile_m // 2)
        t = tile_m
        while t >= lo and HW % t != 0:
            t -= 128
        if t >= lo and HW % t == 0:
            tile_m = t
    return 1, tile_m


def _fused_kernel(x_ref, o_ref):
    """Small-input path: whole (N, C, HW) resident; total + scaled softmax in one body."""
    x = x_ref[...].astype(jnp.float32)                          # (N, C, HW)
    c = x.shape[1]
    m = jnp.max(x, axis=1, keepdims=True)                       # (N, 1, HW)
    ex = jnp.exp(x - m)                                         # (N, C, HW)
    denom = jnp.sum(ex, axis=1, keepdims=True)                  # (N, 1, HW)
    # sum_c log_softmax = sum_c x - C*(m + log denom): no (N,C,HW) log_softmax temp.
    col = jnp.sum(x, axis=1, keepdims=True) - c * (m + jnp.log(denom))
    total = jnp.sum(col)
    o_ref[...] = (ex * ((-total) / denom)).astype(o_ref.dtype)


def _total_kernel(x_ref, tot_ref, *, c, hw, tile_m, needs_mask):
    """Accumulate per-N-block partial sums of log_softmax into tot_ref (1,1)."""
    j = pl.program_id(1)

    @pl.when(j == 0)
    def _():
        tot_ref[...] = jnp.zeros_like(tot_ref)

    x = x_ref[...].astype(jnp.float32)                          # (BN, C, T)
    m = jnp.max(x, axis=1, keepdims=True)                       # (BN, 1, T)
    denom = jnp.sum(jnp.exp(x - m), axis=1, keepdims=True)      # (BN, 1, T)
    col = jnp.sum(x, axis=1, keepdims=True) - c * (m + jnp.log(denom))   # (BN, 1, T)
    colsum = jnp.sum(col, axis=0)                               # (1, T)
    if needs_mask:
        # Last lane-tile may read garbage beyond HW: mask it out before reducing.
        lane = jax.lax.broadcasted_iota(jnp.int32, colsum.shape, 1)
        colsum = jnp.where(j * tile_m + lane < hw, colsum, 0.0)
    tot_ref[...] += jnp.sum(colsum, axis=1, keepdims=True)      # (1, 1) partial


def _scale_kernel(tot_ref, x_ref, o_ref, *, gn):
    """o = exp(x - m) * ((-total) / denom); total = sum of SMEM partials (negated here)."""
    total = tot_ref[0, 0]
    for i in range(1, gn):                                      # static unrolled scalar adds
        total = total + tot_ref[i, 0]
    neg_total = -total
    x = x_ref[...].astype(jnp.float32)                          # (BN, C, T)
    m = jnp.max(x, axis=1, keepdims=True)                       # (BN, 1, T)
    ex = jnp.exp(x - m)                                         # (BN, C, T)
    denom = jnp.sum(ex, axis=1, keepdims=True)                  # (BN, 1, T)
    o_ref[...] = (ex * (neg_total / denom)).astype(o_ref.dtype)


def complementary_ce(pred_score, target_score=None, *,
                     block_budget_bytes=None, force_two_pass=False):
    """Pallas equivalent of complementary_CE.forward (target_score is unused)."""
    N, C, H, W = pred_score.shape
    HW = H * W
    x3 = pred_score.reshape(N, C, HW)                # contiguous NCHW view: free

    budget, vmem_limit = _chip_budgets()
    if block_budget_bytes is not None:
        budget = block_budget_bytes

    c_pad = ((C + 7) // 8) * 8
    padded_bytes = N * c_pad * HW * 4

    # ---- small-input fast path: single fused kernel (1 read + 1 write) ----
    if (not force_two_pass) and padded_bytes <= budget:
        out3 = pl.pallas_call(
            _fused_kernel,
            out_shape=jax.ShapeDtypeStruct((N, C, HW), pred_score.dtype),
            compiler_params=pltpu.CompilerParams(vmem_limit_bytes=vmem_limit),
        )(x3)
        return out3.reshape(N, C, H, W)

    # ---- two-pass path: big lane-dense blocks, per-N partials ----
    bn, tile_m = _plan_blocks(N, C, HW, budget)
    grid_n = N // bn
    grid_m = pl.cdiv(HW, tile_m)
    grid = (grid_n, grid_m)
    needs_mask = (HW % tile_m) != 0

    x_spec = pl.BlockSpec((bn, C, tile_m), lambda n, j: (n, 0, j))

    # Pass 1: per-n-block partial sums of log_softmax; n axis megacore-parallel,
    # the resident (1,1) accumulator is only carried across the j axis.
    totals = pl.pallas_call(
        functools.partial(_total_kernel, c=C, hw=HW, tile_m=tile_m,
                          needs_mask=needs_mask),
        out_shape=jax.ShapeDtypeStruct((grid_n, 1, 1), jnp.float32),
        grid=grid,
        in_specs=[x_spec],
        out_specs=pl.BlockSpec((None, 1, 1), lambda n, j: (n, 0, 0)),
        compiler_params=pltpu.CompilerParams(
            dimension_semantics=("parallel", "arbitrary"),
            vmem_limit_bytes=vmem_limit),
    )(x3)

    totals = totals.reshape(grid_n, 1)
    if grid_n > 16:
        # Keep the in-kernel scalar reduction short for very large batches.
        totals = jnp.sum(totals, axis=0, keepdims=True)
        gn = 1
    else:
        gn = grid_n

    # Pass 2: elementwise scale/store; embarrassingly parallel over (n, j).
    # The partials are summed + negated in-kernel (no extra XLA op in between).
    out3 = pl.pallas_call(
        functools.partial(_scale_kernel, gn=gn),
        out_shape=jax.ShapeDtypeStruct((N, C, HW), pred_score.dtype),
        grid=grid,
        in_specs=[
            pl.BlockSpec(memory_space=pltpu.MemorySpace.SMEM),   # (gn, 1) partials
            x_spec,
        ],
        out_specs=x_spec,
        compiler_params=pltpu.CompilerParams(
            dimension_semantics=("parallel", "parallel"),
            vmem_limit_bytes=vmem_limit),
    )(totals, x3)

    return out3.reshape(N, C, H, W)


def _reference(pred_score):
    sm = jax.nn.softmax(pred_score, axis=1)
    lsm = jax.nn.log_softmax(pred_score, axis=1)
    return -sm * jnp.sum(lsm)


if __name__ == "__main__":
    key = jax.random.PRNGKey(0)
    k1, k2 = jax.random.split(key)

    # Primary small NCHW input (exercises the fused fast path).
    pred_score = jax.random.normal(k1, (2, 4, 16, 16), dtype=jnp.float32)
    target_score = jax.random.normal(k2, (2, 4, 16, 16), dtype=jnp.float32)  # unused, as in PyTorch

    fn = jax.jit(complementary_ce)
    out = jax.block_until_ready(fn(pred_score, target_score))
    assert out.shape == pred_score.shape
    assert jnp.allclose(out, _reference(pred_score), rtol=1e-4, atol=1e-4), \
        "fast-path mismatch vs reference"

    # Exercise the tiled two-pass path: HW=864 (not a multiple of 128) -> cdiv grid
    # + masked lane tail, per-N partials summed in-kernel.
    xb = jax.random.normal(k2, (2, 4, 24, 36), dtype=jnp.float32)
    fb = jax.jit(functools.partial(complementary_ce, force_two_pass=True,
                                   block_budget_bytes=16 * 1024))
    outb = jax.block_until_ready(fb(xb))
    assert jnp.allclose(outb, _reference(xb), rtol=1e-4, atol=1e-4), \
        "two-pass (tail mask) mismatch vs reference"

    # Exercise batch folding: bn=2 rows per block, tile_m = full HW.
    xc = jax.random.normal(k1, (4, 4, 16, 16), dtype=jnp.float32)
    fc = jax.jit(functools.partial(complementary_ce, force_two_pass=True,
                                   block_budget_bytes=16 * 1024))
    outc = jax.block_until_ready(fc(xc))
    assert jnp.allclose(outc, _reference(xc), rtol=1e-4, atol=1e-4), \
        "two-pass (batch-fold) mismatch vs reference"

    print("KERNEL_OK")
</pallas_src>

<mosaic_0001>
module attributes {stable_mosaic.version = 11 : i64} {
  func.func @_fused_kernel(%arg0: memref<2x4x256xf32, #tpu.memory_space<vmem>>, %arg1: memref<2x4x256xf32, #tpu.memory_space<vmem>>) attributes {dimension_semantics = [], scalar_prefetch = 0 : i64, scratch_operands = 0 : i64, tpu.core_type = #tpu.core_type<tc>} {
    %c0 = arith.constant 0 : index
    %c0_0 = arith.constant 0 : index
    %c0_1 = arith.constant 0 : index
    %0 = vector.load %arg0[%c0, %c0_0, %c0_1] : memref<2x4x256xf32, #tpu.memory_space<vmem>>, vector<2x4x256xf32>
    %cst = arith.constant dense<0xFF800000> : vector<2x256xf32>
    %1 = vector.multi_reduction <maximumf>, %0, %cst [1] : vector<2x4x256xf32> to vector<2x256xf32>
    %2 = vector.shape_cast %1 : vector<2x256xf32> to vector<2x1x256xf32>
    %3 = vector.broadcast %2 : vector<2x1x256xf32> to vector<2x4x256xf32>
    %4 = arith.subf %0, %3 : vector<2x4x256xf32>
    %5 = math.exp %4 : vector<2x4x256xf32>
    %cst_2 = arith.constant dense<0.000000e+00> : vector<2x256xf32>
    %6 = vector.multi_reduction <add>, %5, %cst_2 [1] : vector<2x4x256xf32> to vector<2x256xf32>
    %7 = vector.shape_cast %6 : vector<2x256xf32> to vector<2x1x256xf32>
    %cst_3 = arith.constant dense<0.000000e+00> : vector<2x256xf32>
    %8 = vector.multi_reduction <add>, %0, %cst_3 [1] : vector<2x4x256xf32> to vector<2x256xf32>
    %9 = vector.shape_cast %8 : vector<2x256xf32> to vector<2x1x256xf32>
    %10 = math.log %7 : vector<2x1x256xf32>
    %11 = arith.addf %2, %10 : vector<2x1x256xf32>
    %cst_4 = arith.constant 4.000000e+00 : f32
    %12 = vector.broadcast %cst_4 : f32 to vector<2x1x256xf32>
    %13 = arith.mulf %12, %11 : vector<2x1x256xf32>
    %14 = arith.subf %9, %13 : vector<2x1x256xf32>
    %15 = vector.shape_cast %14 : vector<2x1x256xf32> to vector<1x2x1x256xf32>
    %cst_5 = arith.constant dense<0.000000e+00> : vector<1xf32>
    %16 = vector.multi_reduction <add>, %15, %cst_5 [1, 2, 3] : vector<1x2x1x256xf32> to vector<1xf32>
    %17 = vector.shape_cast %16 : vector<1xf32> to vector<1x1x1x1xf32>
    %18 = vector.extract %17[0, 0, 0, 0] : f32 from vector<1x1x1x1xf32>
    %cst_6 = arith.constant 0.000000e+00 : f32
    %19 = arith.subf %cst_6, %18 : f32
    %20 = vector.broadcast %19 : f32 to vector<2x1x256xf32>
    %21 = arith.divf %20, %7 : vector<2x1x256xf32>
    %22 = vector.broadcast %21 : vector<2x1x256xf32> to vector<2x4x256xf32>
    %23 = arith.mulf %5, %22 : vector<2x4x256xf32>
    %c0_7 = arith.constant 0 : index
    %c0_8 = arith.constant 0 : index
    %c0_9 = arith.constant 0 : index
    %24 = vector.load %arg1[%c0_7, %c0_8, %c0_9] : memref<2x4x256xf32, #tpu.memory_space<vmem>>, vector<2x4x256xf32>
    tpu.vector_store %arg1[%c0_7, %c0_8, %c0_9], %23 {strides = array<i32>} : memref<2x4x256xf32, #tpu.memory_space<vmem>>, vector<2x4x256xf32>,
    return
  }
}

</mosaic_0001>

<bundles_post_ra>
// kernel: complementary_ce.1
= control target key start
LH: loop header
LB: loop body
LE: loop exit
PB: predicated region body
PF: predicated region fallthrough
CT: control target
= control target key end

     0   :  { %vm23_vm0 = vcmask 1043456   ;;  %vm168_vm1 = vcmask 1040384   ;;  %s405_s0 = inlined_call_operand.vmem [shape: f32[2,4,256], index: 0, kind: input, shape index: {}]   ;;  %s406_s1 = inlined_call_operand.vmem [shape: f32[2,4,256], index: 1, kind: output, shape index: {}]  }
   0x1   :  { %v8_v0 = vld [vmem:[%s405_s0] sm:$0xff]  ;;  %v9_v1 = vld [vmem:[%s405_s0 + $0x8] sm:$0xff] }
   0x2   :  { %12 = vst [vmem:[#allocation1] ss:$2 sm:$0xff] %v8_v0 }
   0x3   :  { %16 = vst [vmem:[#allocation1 + $0x10] ss:$2 sm:$0xff] %v9_v1 }
   0x9   :  { %v13_v2 = vld.sshfl [vmem:[#allocation1] sm:$0xff pattern:$0x75316420]  ;;  %v14_v3 = vld.sshfl [vmem:[#allocation1 + $0x8] sm:$0xff pattern:$0x75316420] }
   0xa   :  { %v17_v4 = vld.sshfl [vmem:[#allocation1 + $0x10] sm:$0xff pattern:$0x75316420]  ;;  %v18_v5 = vld.sshfl [vmem:[#allocation1 + $0x18] sm:$0xff pattern:$0x75316420] }
   0xb   :  { %v24_v6 = vsel %vm23_vm0, %v13_v2, -inf  ;;  %v31_v7 = vsel %vm23_vm0, %v14_v3, -inf  ;;  %v38_v8 = vsel %vm23_vm0, %v17_v4, -inf  ;;  %v45_v9 = vsel %vm23_vm0, %v18_v5, -inf }
   0xc   :  { %v25_v10 = vrot.slane %v24_v6, 4  ;;  %v32_v11 = vrot.slane %v31_v7, 4  ;;  %v39_v12 = vrot.slane %v38_v8, 4  ;;  %v46_v13 = vrot.slane %v45_v9, 4 }
   0xe   :  { %v26_v14 = vmax.f32 %v24_v6, %v25_v10  ;;  %v33_v15 = vmax.f32 %v31_v7, %v32_v11  ;;  %v40_v16 = vmax.f32 %v38_v8, %v39_v12  ;;  %v47_v17 = vmax.f32 %v45_v9, %v46_v13 }
  0x10   :  { %v27_v18 = vrot.slane %v26_v14, 2  ;;  %v34_v19 = vrot.slane %v33_v15, 2  ;;  %v41_v20 = vrot.slane %v40_v16, 2  ;;  %v48_v21 = vrot.slane %v47_v17, 2 }
  0x12   :  { %v28_v22 = vmax.f32 %v26_v14, %v27_v18  ;;  %v35_v23 = vmax.f32 %v33_v15, %v34_v19  ;;  %v42_v24 = vmax.f32 %v40_v16, %v41_v20  ;;  %v49_v25 = vmax.f32 %v47_v17, %v48_v21 }
  0x14   :  { %v29_v26 = vrot.slane %v28_v22, 1  ;;  %v36_v27 = vrot.slane %v35_v23, 1  ;;  %v43_v28 = vrot.slane %v42_v24, 1  ;;  %v50_v29 = vrot.slane %v49_v25, 1 }
  0x16   :  { %v307_v30 = vmax.f32 %v28_v22, %v29_v26  ;;  %v309_v31 = vmax.f32 %v35_v23, %v36_v27  ;;  %v311_v32 = vmax.f32 %v42_v24, %v43_v28  ;;  %v313_v33 = vmax.f32 %v49_v25, %v50_v29 }
  0x18   :  { %v56_v34 = vrot.slane %v309_v31, 4  ;;  %v57_v35 = vrot.slane %v313_v33, 4 }
  0x1a   :  { %v58_v36 = vsel %vm23_vm0, %v307_v30, %v56_v34  ;;  %v59_v37 = vsel %vm23_vm0, %v311_v32, %v57_v35 }
  0x1b   :  { %v62_v38 = vsub.f32 %v8_v0, %v58_v36  ;;  %v63_v39 = vsub.f32 %v9_v1, %v59_v37 }
  0x1d   :  { %v64_v40 = vmul.f32 1.442695, %v62_v38  ;;  %v66_v41 = vmul.f32 1.442695, %v63_v39 }
  0x1f   :  { %267 = vpow2.f32 %v64_v40 }
  0x20   :  { %269 = vpow2.f32 %v66_v41 }
  0x25   :  { %v321_v42 = vpop.eup %267 }
  0x26   :  { %v323_v43 = vpop.eup %269  ;;  %70 = vst [vmem:[#allocation1] ss:$2 sm:$0xff] %v321_v42 }
  0x27   :  { %74 = vst [vmem:[#allocation1 + $0x10] ss:$2 sm:$0xff] %v323_v43 }
  0x2d   :  { %v71_v44 = vld.sshfl [vmem:[#allocation1] sm:$0xff pattern:$0x75316420]  ;;  %v72_v45 = vld.sshfl [vmem:[#allocation1 + $0x8] sm:$0xff pattern:$0x75316420] }
  0x2e   :  { %v75_v46 = vld.sshfl [vmem:[#allocation1 + $0x10] sm:$0xff pattern:$0x75316420]  ;;  %v76_v47 = vld.sshfl [vmem:[#allocation1 + $0x18] sm:$0xff pattern:$0x75316420] }
  0x2f   :  { %v81_v48 = vsel %vm23_vm0, %v71_v44, 0.0  ;;  %v88_v49 = vsel %vm23_vm0, %v72_v45, 0.0  ;;  %v95_v50 = vsel %vm23_vm0, %v75_v46, 0.0  ;;  %v102_v51 = vsel %vm23_vm0, %v76_v47, 0.0  ;;  %109 = vst [vmem:[#allocation1] ss:$2 sm:$0xff] %v8_v0 }
  0x30   :  { %v82_v52 = vrot.slane %v81_v48, 4  ;;  %v89_v53 = vrot.slane %v88_v49, 4  ;;  %v96_v54 = vrot.slane %v95_v50, 4  ;;  %v103_v55 = vrot.slane %v102_v51, 4  ;;  %113 = vst [vmem:[#allocation1 + $0x10] ss:$2 sm:$0xff] %v9_v1 }
  0x32   :  { %v83_v56 = vadd.f32 %v82_v52, %v81_v48  ;;  %v90_v57 = vadd.f32 %v89_v53, %v88_v49  ;;  %v97_v58 = vadd.f32 %v96_v54, %v95_v50  ;;  %v104_v59 = vadd.f32 %v103_v55, %v102_v51 }
  0x34   :  { %v84_v60 = vrot.slane %v83_v56, 2  ;;  %v91_v61 = vrot.slane %v90_v57, 2  ;;  %v98_v62 = vrot.slane %v97_v58, 2  ;;  %v105_v63 = vrot.slane %v104_v59, 2 }
  0x36   :  { %v85_v2 = vadd.f32 %v84_v60, %v83_v56  ;;  %v92_v3 = vadd.f32 %v91_v61, %v90_v57  ;;  %v99_v4 = vadd.f32 %v98_v62, %v97_v58  ;;  %v106_v5 = vadd.f32 %v105_v63, %v104_v59  ;;  %v110_v6 = vld.sshfl [vmem:[#allocation1] sm:$0xff pattern:$0x75316420]  ;;  %v111_v7 = vld.sshfl [vmem:[#allocation1 + $0x8] sm:$0xff pattern:$0x75316420] }
  0x37   :  { %v114_v0 = vld.sshfl [vmem:[#allocation1 + $0x10] sm:$0xff pattern:$0x75316420]  ;;  %v115_v8 = vld.sshfl [vmem:[#allocation1 + $0x18] sm:$0xff pattern:$0x75316420] }
  0x38   :  { %v86_v9 = vrot.slane %v85_v2, 1  ;;  %v93_v10 = vrot.slane %v92_v3, 1  ;;  %v100_v11 = vrot.slane %v99_v4, 1  ;;  %v120_v1 = vsel %vm23_vm0, %v110_v6, 0.0 }
  0x39   :  { %v127_v12 = vsel %vm23_vm0, %v111_v7, 0.0  ;;  %v134_v13 = vsel %vm23_vm0, %v114_v0, 0.0  ;;  %v141_v14 = vsel %vm23_vm0, %v115_v8, 0.0  ;;  %v107_v17 = vrot.slane %v106_v5, 1 }
  0x3a   :  { %v335_v15 = vadd.f32 %v86_v9, %v85_v2  ;;  %v337_v16 = vadd.f32 %v93_v10, %v92_v3  ;;  %v121_v18 = vrot.slane %v120_v1, 4  ;;  %v128_v19 = vrot.slane %v127_v12, 4 }
  0x3b   :  { %v135_v20 = vrot.slane %v134_v13, 4  ;;  %v142_v21 = vrot.slane %v141_v14, 4  ;;  %v339_v22 = vadd.f32 %v100_v11, %v99_v4  ;;  %v342_v27 = vadd.f32 %v107_v17, %v106_v5 }
  0x3c   :  { %271 = vlog2.f32 %v335_v15  ;;  %v122_v23 = vadd.f32 %v121_v18, %v120_v1  ;;  %v129_v24 = vadd.f32 %v128_v19, %v127_v12  ;;  %vm207_vm2 = vweird.f32 %v337_v16 }
  0x3d   :  { %v136_v25 = vadd.f32 %v135_v20, %v134_v13  ;;  %v143_v26 = vadd.f32 %v142_v21, %v141_v14  ;;  %273 = vlog2.f32 %v337_v16  ;;  %vm237_vm4 = vweird.f32 %v342_v27 }
  0x3e   :  { %v123_v28 = vrot.slane %v122_v23, 2  ;;  %v130_v29 = vrot.slane %v129_v24, 2  ;;  %275 = vlog2.f32 %v339_v22  ;;  %vm192_vm6 = vweird.f32 %v335_v15 }
  0x3f   :  { %v137_v34 = vrot.slane %v136_v25, 2  ;;  %v144_v35 = vrot.slane %v143_v26, 2  ;;  %277 = vlog2.f32 %v342_v27  ;;  %vm222_vm9 = vweird.f32 %v339_v22 }
  0x40   :  { %v124_v36 = vadd.f32 %v123_v28, %v122_v23  ;;  %v131_v37 = vadd.f32 %v130_v29, %v129_v24  ;;  %279 = vrcp.f32 %v335_v15 }
  0x41   :  { %v138_v38 = vadd.f32 %v137_v34, %v136_v25  ;;  %v145_v41 = vadd.f32 %v144_v35, %v143_v26  ;;  %281 = vrcp.f32 %v337_v16 }
  0x42   :  { %v272_v39 = vpop.eup %271  ;;  %v125_v40 = vrot.slane %v124_v36, 1  ;;  %v132_v45 = vrot.slane %v131_v37, 1  ;;  %283 = vrcp.f32 %v342_v27 }
  0x43   :  { %v274_v44 = vpop.eup %273  ;;  %v149_v46 = vmul.f32 0.6931472, %v272_v39  ;;  %v139_v47 = vrot.slane %v138_v38, 1  ;;  %v146_v52 = vrot.slane %v145_v41, 1  ;;  %285 = vrcp.f32 %v339_v22 }
  0x44   :  { %v276_v48 = vpop.eup %275  ;;  %v126_v49 = vadd.f32 %v125_v40, %v124_v36  ;;  %v151_v50 = vmul.f32 0.6931472, %v274_v44  ;;  %v133_v55 = vadd.f32 %v132_v45, %v131_v37  ;;  %v213_v40 = vand.u32 2147483648, %v337_v16 }
  0x45   :  { %v156_v51 = vadd.f32 %v149_v46, %v307_v30  ;;  %v153_v53 = vmul.f32 0.6931472, %v276_v48  ;;  %v278_v54 = vpop.eup %277  ;;  %v140_v58 = vadd.f32 %v139_v47, %v138_v38  ;;  %v147_v63 = vadd.f32 %v146_v52, %v145_v41 }
  0x46   :  { %v157_v56 = vadd.f32 %v151_v50, %v309_v31  ;;  %v155_v59 = vmul.f32 0.6931472, %v278_v54  ;;  %v280_v18 = vpop.eup %279  ;;  %v243_v41 = vand.u32 2147483648, %v342_v27  ;;  %v211_v45 = vand.u32 2147483647, %v337_v16 }
  0x47   :  { %v160_v57 = vmul.f32 4.0, %v156_v51  ;;  %v158_v60 = vadd.f32 %v153_v53, %v311_v32  ;;  %v282_v19 = vpop.eup %281  ;;  %v188_v25 = vmul.f32 %v280_v18, %v335_v15  ;;  %vm193_vm7 = vweird.f32 %v280_v18 }
  0x48   :  { %v161_v61 = vmul.f32 4.0, %v157_v56  ;;  %v159_v2 = vadd.f32 %v155_v59, %v313_v33  ;;  %v284_v20 = vpop.eup %283  ;;  %v203_v23 = vmul.f32 %v282_v19, %v337_v16  ;;  %vm208_vm3 = vweird.f32 %v282_v19  ;;  %vm377_vm12 = vmor %vm192_vm6, %vm193_vm7 }
  0x49   :  { %v164_v62 = vsub.f32 %v126_v49, %v160_v57  ;;  %v162_v3 = vmul.f32 4.0, %v158_v60  ;;  %v286_v21 = vpop.eup %285  ;;  %v233_v24 = vmul.f32 %v284_v20, %v342_v27  ;;  %v189_v34 = vsub.f32 1.0, %v188_v25  ;;  %vm365_vm8 = vmor %vm207_vm2, %vm208_vm3 }
  0x4a   :  { %v165_v4 = vsub.f32 %v133_v55, %v161_v61  ;;  %v163_v5 = vmul.f32 4.0, %v159_v2  ;;  %v218_v26 = vmul.f32 %v286_v21, %v339_v22  ;;  %v204_v28 = vsub.f32 1.0, %v203_v23 }
  0x4b   :  { %v169_v30 = vsel %vm168_vm1, %v164_v62, 0.0  ;;  %v166_v6 = vsub.f32 %v140_v58, %v162_v3  ;;  %v234_v29 = vsub.f32 1.0, %v233_v24  ;;  %v190_v38 = vmul.f32 %v280_v18, %v189_v34 }
  0x4c   :  { %v170_v7 = vsel %vm168_vm1, %v165_v4, 0.0  ;;  %v167_v0 = vsub.f32 %v147_v63, %v163_v5  ;;  %v219_v35 = vsub.f32 1.0, %v218_v26  ;;  %v205_v36 = vmul.f32 %v282_v19, %v204_v28 }
  0x4d   :  { %v171_v8 = vadd.f32 %v170_v7, %v169_v30  ;;  %v172_v31 = vsel %vm168_vm1, %v166_v6, 0.0  ;;  %v235_v37 = vmul.f32 %v284_v20, %v234_v29  ;;  %vm238_vm5 = vweird.f32 %v284_v20 }
  0x4e   :  { %v174_v10 = vsel %vm168_vm1, %v167_v0, 0.0  ;;  %v220_v39 = vmul.f32 %v286_v21, %v219_v35  ;;  %v206_v44 = vadd.f32 %v282_v19, %v205_v36  ;;  %vm223_vm10 = vweird.f32 %v286_v21  ;;  %vm373_vm11 = vmor %vm237_vm4, %vm238_vm5 }
  0x4f   :  { %v173_v9 = vadd.f32 %v172_v31, %v171_v8  ;;  %v236_v47 = vadd.f32 %v284_v20, %v235_v37  ;;  %v241_v48 = vand.u32 2147483647, %v342_v27  ;;  %v198_v49 = vand.u32 2147483648, %v335_v15  ;;  %vm383_vm13 = vmor %vm222_vm9, %vm223_vm10 }
  0x50   :  { %v228_v50 = vand.u32 2147483648, %v339_v22  ;;  %v191_v52 = vadd.f32 %v280_v18, %v190_v38  ;;  %v196_v53 = vand.u32 2147483647, %v335_v15  ;;  %v221_v54 = vadd.f32 %v286_v21, %v220_v39 }
  0x51   :  { %v175_v11 = vadd.f32 %v174_v10, %v173_v9  ;;  %v226_v55 = vand.u32 2147483647, %v339_v22  ;;  %v214_v56 = vor.u32 1.1754944e-38, %v213_v40  ;;  %v244_v57 = vor.u32 1.1754944e-38, %v243_v41 }
  0x52   :  { %v210_v58 = vsel %vm365_vm8, %v282_v19, %v206_v44  ;;  %vm212_vm14 = vcmp.eq.f32.partialorder %v211_v45, 8.507059e+37  ;;  %v240_v59 = vsel %vm373_vm11, %v284_v20, %v236_v47  ;;  %vm242_vm15 = vcmp.eq.f32.partialorder %v241_v48, 8.507059e+37 }
  0x53   :  { %176 = vadd.xlane.f32.xlu0 %v175_v11  ;;  %v199_v60 = vor.u32 1.1754944e-38, %v198_v49  ;;  %v229_v61 = vor.u32 1.1754944e-38, %v228_v50  ;;  %v195_v15 = vsel %vm377_vm12, %v280_v18, %v191_v52  ;;  %vm197_vm1 = vcmp.eq.f32.partialorder %v196_v53, 8.507059e+37 }
  0x54   :  { %v225_v22 = vsel %vm383_vm13, %v286_v21, %v221_v54  ;;  %vm227_vm2 = vcmp.eq.f32.partialorder %v226_v55, 8.507059e+37  ;;  %v215_v62 = vsel %vm212_vm14, %v214_v56, %v210_v58  ;;  %v245_v63 = vsel %vm242_vm15, %v244_v57, %v240_v59 }
  0x55   :  { %v200_v3 = vsel %vm197_vm1, %v199_v60, %v195_v15  ;;  %v230_v4 = vsel %vm227_vm2, %v229_v61, %v225_v22 }
  0xc6   :  { %v177_v32 = vpop.xlane.xlu0 %176 }
  0xc7   :  { %v178_v1 = vrot.slane %v177_v32, 4 }
  0xc9   :  { %v179_v12 = vadd.f32 %v178_v1, %v177_v32 }
  0xcb   :  { %v180_v13 = vrot.slane %v179_v12, 2 }
  0xcd   :  { %v181_v14 = vadd.f32 %v180_v13, %v179_v12 }
  0xcf   :  { %v182_v17 = vrot.slane %v181_v14, 1 }
  0xd1   :  { %v183_v33 = vadd.f32 %v182_v17, %v181_v14 }
  0xd3   :  { %265 = vpush %v183_v33 }
 0x104   :  { %s266_s0 = spop %265 }
 0x105   :  { %s185_s10 = ssub.f32 0.0, %s266_s0 }
 0x107   :  { %v186_v2 = vstv %s185_s10 }
 0x108   :  { %v216_v30 = vmul.f32 %v215_v62, %v186_v2  ;;  %v246_v5 = vmul.f32 %v245_v63, %v186_v2  ;;  %v201_v6 = vmul.f32 %v200_v3, %v186_v2  ;;  %v231_v7 = vmul.f32 %v230_v4, %v186_v2 }
 0x10a   :  { %v251_v0 = vrot.slane %v216_v30, 4  ;;  %v252_v8 = vrot.slane %v246_v5, 4 }
 0x10c   :  { %v253_v31 = vsel %vm23_vm0, %v201_v6, %v251_v0  ;;  %v254_v9 = vsel %vm23_vm0, %v231_v7, %v252_v8 }
 0x10d   :  { %v257_v10 = vmul.f32 %v321_v42, %v253_v31  ;;  %v258_v11 = vmul.f32 %v323_v43, %v254_v9 }
 0x10f   :  { %259 = vst [vmem:[%s406_s1] sm:$0xff] %v257_v10 }
 0x110   :  { %260 = vst [vmem:[%s406_s1 + $0x8] sm:$0xff] %v258_v11 }

</bundles_post_ra>
